<compile_context>
chip_gen: v5e
topology: v5e:2x2
jax: 0.10.0
libtpu: 0.0.40
codegen_flags: <defaults>
</compile_context>

<pallas_src>
import jax
import jax.numpy as jnp
from jax.experimental import pallas as pl
from jax.experimental.pallas import tpu as pltpu


def _make_hoisted_kernel(c_x: int, c_y: int, tn: int):
    """Per-batch hoisted broadcast of y; requires N-tile grid axis 'arbitrary'."""

    def kernel(x_ref, y_ref, o_ref, ybc_ref):
        # x_ref: (1, c_x, tn), y_ref: (1, c_y, 1),
        # o_ref: (1, c_x + c_y, tn), ybc_ref: (1, c_y, tn) VMEM scratch.
        @pl.when(pl.program_id(1) == 0)
        def _():
            # Lane-broadcast y once per batch (first N-tile only).
            ybc_ref[...] = jnp.broadcast_to(y_ref[...], (1, c_y, tn))

        # Two direct sub-view stores: no in-register concat / VMEM stitching.
        o_ref[:, :c_x, :] = x_ref[...]
        o_ref[:, c_x:, :] = ybc_ref[...]

    return kernel


def _make_simple_kernel(c_x: int, c_y: int, tn: int):
    """Scratch-free fallback (B == 1 or single N tile); broadcast per tile."""

    def kernel(x_ref, y_ref, o_ref):
        o_ref[:, :c_x, :] = x_ref[...]
        o_ref[:, c_x:, :] = jnp.broadcast_to(y_ref[...], (1, c_y, tn))

    return kernel


def _vmem_block_bytes(rows: int, cols: int, dtype) -> int:
    """Conservative VMEM footprint of one 2-D block under (8,128) tiling."""
    itemsize = jnp.dtype(dtype).itemsize
    pack = max(1, 4 // itemsize)  # sub-32-bit dtypes pack rows along sublanes
    r = pl.cdiv(rows, 8 * pack) * 8 * pack
    c = pl.cdiv(cols, 128) * 128
    return r * c * itemsize


def pointnet_concatenate(x: jax.Array, y: jax.Array, *, max_tn: int = 2048) -> jax.Array:
    """x: (B, C_x, N), y: (B, C_y, 1) -> (B, C_x + C_y, N).

    max_tn: maximum lane tile over the point axis N (multiple of 128).
    """
    b, c_x, n = x.shape
    b_y, c_y, one = y.shape
    assert b == b_y and one == 1
    assert x.dtype == y.dtype
    assert max_tn % 128 == 0
    c_out = c_x + c_y
    dtype = x.dtype

    # Tile the point axis.  If N fits in one tile we use the full dim (block ==
    # full array dim exemption); otherwise TN is a multiple of 128 and the
    # trailing partial block is masked by Pallas (correct for any N).
    tn = n if n <= max_tn else max_tn
    n_tiles = pl.cdiv(n, tn)

    # Per-batch broadcast hoist needs the N axis 'arbitrary' + batch outermost;
    # only worth it (and only safe w.r.t. megacore) when there are >=2 batches.
    hoist = (b >= 2) and (n_tiles >= 2)

    itemsize = jnp.dtype(dtype).itemsize
    cost = pl.CostEstimate(
        flops=0,
        transcendentals=0,
        bytes_accessed=(b * c_x * n + b * c_y + b * c_out * n) * itemsize,
    )

    # Double-buffered in/out blocks (+ per-batch broadcast scratch if hoisted),
    # plus slack.  Never below the largest default scoped limit (32 MiB).
    vmem_bytes = (
        2 * _vmem_block_bytes(c_out, tn, dtype)
        + 2 * _vmem_block_bytes(c_x, tn, dtype)
        + 2 * _vmem_block_bytes(c_y, 1, dtype)
    )
    if hoist:
        vmem_bytes += _vmem_block_bytes(c_y, tn, dtype)
    vmem_limit = int(max(32 << 20, vmem_bytes + (4 << 20)))

    in_specs = [
        # x: one (c_x, TN) tile per (batch, N-tile) grid step.
        pl.BlockSpec((1, c_x, tn), lambda i, j: (i, 0, j)),
        # y: same block for every N-tile -> re-DMA'd only on batch change.
        pl.BlockSpec((1, c_y, 1), lambda i, j: (i, 0, 0)),
    ]
    out_specs = pl.BlockSpec((1, c_out, tn), lambda i, j: (i, 0, j))

    if hoist:
        kernel = _make_hoisted_kernel(c_x, c_y, tn)
        scratch_shapes = [pltpu.VMEM((1, c_y, tn), dtype)]
        semantics = ("parallel", "arbitrary")
    else:
        kernel = _make_simple_kernel(c_x, c_y, tn)
        scratch_shapes = []
        semantics = ("parallel", "parallel")

    return pl.pallas_call(
        kernel,
        out_shape=jax.ShapeDtypeStruct((b, c_out, n), dtype),
        grid_spec=pltpu.PrefetchScalarGridSpec(
            num_scalar_prefetch=0,
            grid=(b, n_tiles),
            in_specs=in_specs,
            out_specs=out_specs,
            scratch_shapes=scratch_shapes,
        ),
        compiler_params=pltpu.CompilerParams(
            dimension_semantics=semantics,
            vmem_limit_bytes=vmem_limit,
        ),
        cost_estimate=cost,
    )(x, y)


if __name__ == "__main__":
    key = jax.random.PRNGKey(0)
    kx, ky, kx1, ky1 = jax.random.split(key, 4)

    # Small shapes consistent with the module: (B, point_dim, N) point cloud,
    # (B, feat_dim, 1) shape descriptor (real module uses feat_dim=1024).
    B, point_dim, N, feat_dim = 2, 3, 320, 32
    x = jax.random.normal(kx, (B, point_dim, N), dtype=jnp.float32)
    y = jax.random.normal(ky, (B, feat_dim, 1), dtype=jnp.float32)

    # Hoisted path: grid = (2 batches, 3 N-tiles), incl. a partial trailing tile.
    out = jax.block_until_ready(pointnet_concatenate(x, y, max_tn=128))
    ref = jnp.concatenate([x, jnp.broadcast_to(y, (B, feat_dim, N))], axis=1)
    assert out.shape == (B, point_dim + feat_dim, N)
    assert jnp.allclose(out, ref)

    # B == 1 fallback path (scratch-free kernel, both grid axes "parallel").
    x1 = jax.random.normal(kx1, (1, point_dim, 256), dtype=jnp.float32)
    y1 = jax.random.normal(ky1, (1, feat_dim, 1), dtype=jnp.float32)
    out1 = jax.block_until_ready(pointnet_concatenate(x1, y1, max_tn=128))
    ref1 = jnp.concatenate([x1, jnp.broadcast_to(y1, (1, feat_dim, 256))], axis=1)
    assert jnp.allclose(out1, ref1)

    print("KERNEL_OK")
</pallas_src>

<mosaic_0001>
module attributes {stable_mosaic.version = 11 : i64} {
  func.func @kernel(%arg0: i32, %arg1: i32, %arg2: memref<1x3x128xf32, #tpu.memory_space<vmem>>, %arg3: memref<1x32x1xf32, #tpu.memory_space<vmem>>, %arg4: memref<1x35x128xf32, #tpu.memory_space<vmem>>, %arg5: memref<1x32x128xf32, #tpu.memory_space<vmem>>) attributes {dimension_semantics = [#tpu.dimension_semantics<parallel>, #tpu.dimension_semantics<arbitrary>], iteration_bounds = array<i64: 2, 3>, scalar_prefetch = 0 : i64, scratch_operands = 1 : i64, tpu.core_type = #tpu.core_type<tc>, window_params = [{transform_indices = @transform_0, window_bounds = array<i64: 1, 3, 128>}, {transform_indices = @transform_1, window_bounds = array<i64: 1, 32, 1>}, {transform_indices = @transform_2, window_bounds = array<i64: 1, 35, 128>}]} {
    %c0_i32 = arith.constant 0 : i32
    %0 = arith.cmpi eq, %arg1, %c0_i32 : i32
    %1 = arith.extui %0 : i1 to i32
    %c0_i32_0 = arith.constant 0 : i32
    %2 = arith.cmpi ne, %1, %c0_i32_0 : i32
    scf.if %2 {
      %c0_11 = arith.constant 0 : index
      %c0_12 = arith.constant 0 : index
      %c0_13 = arith.constant 0 : index
      %7 = vector.load %arg3[%c0_11, %c0_12, %c0_13] : memref<1x32x1xf32, #tpu.memory_space<vmem>>, vector<1x32x1xf32>
      %8 = vector.shape_cast %7 : vector<1x32x1xf32> to vector<1x32x1xf32>
      %9 = vector.broadcast %8 : vector<1x32x1xf32> to vector<1x32x128xf32>
      %c0_14 = arith.constant 0 : index
      %c0_15 = arith.constant 0 : index
      %c0_16 = arith.constant 0 : index
      %10 = vector.load %arg5[%c0_14, %c0_15, %c0_16] : memref<1x32x128xf32, #tpu.memory_space<vmem>>, vector<1x32x128xf32>
      tpu.vector_store %arg5[%c0_14, %c0_15, %c0_16], %9 {strides = array<i32>} : memref<1x32x128xf32, #tpu.memory_space<vmem>>, vector<1x32x128xf32>,
    } else {
    }
    %c0 = arith.constant 0 : index
    %c0_1 = arith.constant 0 : index
    %c0_2 = arith.constant 0 : index
    %3 = vector.load %arg2[%c0, %c0_1, %c0_2] : memref<1x3x128xf32, #tpu.memory_space<vmem>>, vector<1x3x128xf32>
    %c0_3 = arith.constant 0 : index
    %c0_4 = arith.constant 0 : index
    %c0_5 = arith.constant 0 : index
    %4 = vector.load %arg4[%c0_3, %c0_4, %c0_5] : memref<1x35x128xf32, #tpu.memory_space<vmem>>, vector<1x3x128xf32>
    tpu.vector_store %arg4[%c0_3, %c0_4, %c0_5], %3 {strides = array<i32>} : memref<1x35x128xf32, #tpu.memory_space<vmem>>, vector<1x3x128xf32>,
    %c0_6 = arith.constant 0 : index
    %c0_7 = arith.constant 0 : index
    %c0_8 = arith.constant 0 : index
    %5 = vector.load %arg5[%c0_6, %c0_7, %c0_8] : memref<1x32x128xf32, #tpu.memory_space<vmem>>, vector<1x32x128xf32>
    %c0_9 = arith.constant 0 : index
    %c3 = arith.constant 3 : index
    %c0_10 = arith.constant 0 : index
    %6 = vector.load %arg4[%c0_9, %c3, %c0_10] : memref<1x35x128xf32, #tpu.memory_space<vmem>>, vector<1x32x128xf32>
    tpu.vector_store %arg4[%c0_9, %c3, %c0_10], %5 {strides = array<i32>} : memref<1x35x128xf32, #tpu.memory_space<vmem>>, vector<1x32x128xf32>,
    return
  }
  func.func @transform_0(%arg0: i32, %arg1: i32) -> (i32, i32, i32) {
    %c0_i32 = arith.constant 0 : i32
    %c0_i32_0 = arith.constant 0 : i32
    return %arg0, %c0_i32, %arg1 : i32, i32, i32
  }
  func.func @transform_1(%arg0: i32, %arg1: i32) -> (i32, i32, i32) {
    %c0_i32 = arith.constant 0 : i32
    %c0_i32_0 = arith.constant 0 : i32
    %c0_i32_1 = arith.constant 0 : i32
    return %arg0, %c0_i32, %c0_i32_0 : i32, i32, i32
  }
  func.func @transform_2(%arg0: i32, %arg1: i32) -> (i32, i32, i32) {
    %c0_i32 = arith.constant 0 : i32
    %c0_i32_0 = arith.constant 0 : i32
    return %arg0, %c0_i32, %arg1 : i32, i32, i32
  }
}

</mosaic_0001>

<bundles_post_ra>
// kernel: tpu_custom_call.1
= control target key start
LH: loop header
LB: loop body
LE: loop exit
PB: predicated region body
PF: predicated region fallthrough
CT: control target
= control target key end

     0   :  { %s514_s9 = smov 0   ;;  %s516_s10 = smov 0   ;;  %s625_s0 = inlined_call_operand.vmem [shape: f32[2,3,320], index: 0, kind: input, shape index: {}]   ;;  %s626_s1 = inlined_call_operand.vmem [shape: f32[2,32,1], index: 1, kind: input, shape index: {}]   ;;  %s627_s2 = inlined_call_operand.vmem [shape: f32[2,35,320], index: 2, kind: output, shape index: {}]  }
   0x1   :  { %s518_s11 = smov 0   ;;  %s520_s12 = smov 0  }
   0x2   :  { %s522_s13 = smov 0   ;;  %s524_s14 = smov 0  }
   0x3   :  { %s526_s15 = smov 0  }
   0x4 LB: > { %s21_s16 = sadd.s32 1, %s488_s13  ;;  %s24_s17 = sadd.s32 1, %s492_s14  ;;  %s496_s15 = sphi %s526_s15, %s12_s15   ;;  %s492_s14 = sphi %s524_s14, %s634_s14   ;;  %s488_s13 = sphi %s522_s13, %s633_s13   ;;  %s484_s12 = sphi %s520_s12, %s632_s12   ;;  %s480_s11 = sphi %s518_s11, %s631_s11   ;;  %s476_s10 = sphi %s516_s10, %s630_s10   ;;  %s472_s9 = sphi %s514_s9, %s629_s9  }
   0x5   : > { %p22_p0 = scmp.ge.s32.totalorder %s21_s16, 3  ;;  %s367_s18 = sadd.s32 4294967295, %s496_s15  }
   0x6   : > { %p97_p1 = scmp.ne.s32.totalorder %s476_s10, %s472_s9  ;;  %p98_p2 = scmp.eq.s32.totalorder %s367_s18, 5 }
   0x7   : > { %s636_s16 = smov (%p22_p0, %s21_s16), 0  ;;  %s638_s17 = smov (!%p22_p0, %s24_s17), %s492_s14 }
   0x8   : > { %s83_s19 = ssub.s32 %s488_s13, %s636_s16  ;;  %p26_p3 = scmp.ge.s32.totalorder %s638_s17, 2 }
   0x9   : > { %p371_p4 = scmp.ge.s32.totalorder %s496_s15, 1  ;;  %p560_p5 = por %p98_p2, %p97_p1 }
   0xa   : > { %p141_p6 = scmp.lt.s32.totalorder %s496_s15, 7  ;;  %s640_s17 = smov (%p26_p3, %s638_s17), 0 }
   0xb   : > { %s82_s21 = ssub.s32 %s492_s14, %s640_s17  ;;  %s87_s23 = sadd.s32 1, %s476_s10 }
   0xc   : > { %p142_p7 = pnand %p371_p4, %p141_p6  ;;  %s84_s22 = sor.u32 %s83_s19, %s82_s21 }
   0xd   : > { %p85_p8 = scmp.eq.s32.totalorder %s84_s22, 0  ;;  %s167_s25 = sand.u32 (!%p142_p7), 1, %s472_s9  }
   0xe   : > { %145 = sbr.rel (%p142_p7) target bundleno = 172 (0xac), region = 28  ;;  %p170_p9 = scmp.lt.s32.totalorder (!%p142_p7), %s484_s12, 1 }
   0xf   : > { %s571_s24 = scalar_select %p85_p8, %s476_s10, %s87_s23  }
  0x10   : > { %s380_s26 = smul.u32 (!%p142_p7), 40, %s167_s25  ;;  %p172_p10 = scmp.lt.s32.totalorder (!%p142_p7), %s480_s11, 2 }
  0x11   : > { %p375_p11 = scmp.ne.s32.totalorder (!%p142_p7), %s480_s11, 0 }
  0x12   : > { %s584_s21 = scalar_lea.vmem (!%p142_p7), [#allocation3], %s380_s26 }
  0x13   : > { %s171_s27 = scalar_select %p170_p9, %s484_s12, 1 }
  0x14   : > { %s173_s28 = scalar_select %p172_p10, %s480_s11, 2 }
  0x15   : > { %s381_s29 = smul.u32 3, %s171_s27  ;;  %s379_s30 = sshll.u32 %s171_s27, 5 }
  0x16   : > { %s182_s5 = scalar_lea.vmem %s626_s1, %s379_s30  ;;  %186 = sbr.rel (%p375_p11) target bundleno = 154 (0x9a), region = 32 }
  0x17   : > { %s175_s6 = sadd.s32 %s381_s29, %s173_s28 }
  0x18   : > { %s372_s7 = sshll.u32 %s175_s6, 2 }
  0x19   : > { %s177_s19 = scalar_lea.vmem %s625_s0, %s372_s7 }
  0x1b   : > { %v189_v0 = vld [vmem:[%s182_s5 + $0x10] sm:$0xff]  ;;  %v187_v1 = vld [vmem:[%s182_s5] sm:$0xff]  ;;  %v498_v2 = vmov 0   ;;  %v190_v3 = vld [vmem:[%s182_s5 + $0x18] sm:$0xff] }
  0x1c   : > { %441 = vset.pattern.permute.xlu1 %v498_v2  ;;  %440 = vset.pattern.permute.xlu0 %v498_v2  ;;  %v188_v4 = vld [vmem:[%s182_s5 + $0x8] sm:$0xff] }
  0x1d   : > { %203 = vperm.xlu1 %441, %v189_v0   ;;  %193 = vperm.xlu0 %440, %v187_v1  }
  0x25   : > { %208 = vperm.xlu1 %441, %v190_v3   ;;  %198 = vperm.xlu0 %440, %v188_v4  }
  0x8f   : > { %v204_v5 = vpop.permute.xlu1 %203  ;;  %v194_v6 = vpop.permute.xlu0 %193 }
  0x90   : > { %213 = vst [vmem:[#allocation2 + $0x18] sm:$0xff] %v204_v5 }
  0x91   : > { %211 = vst [vmem:[#allocation2 + $0x10] sm:$0xff] %v194_v6 }
  0x97   : > { %v209_v7 = vpop.permute.xlu1 %208  ;;  %v199_v8 = vpop.permute.xlu0 %198 }
  0x98   : > { %214 = vst [vmem:[#allocation2 + $0x8] sm:$0xff] %v209_v7 }
  0x99   : > { %212 = vst [vmem:[#allocation2] sm:$0xff] %v199_v8 }
  0x9a PF: > { %v215_v9 = vld [vmem:[%s177_s19] sm:$0x7]  ;;  %v217_v10 = vld [vmem:[#allocation2 + $0x10] sm:$0xff]  ;;  %v219_v12 = vld [vmem:[#allocation2 + $0x18] sm:$0xff]  ;;  %s382_s9 = smul.u32 (%p560_p5), 15, %s484_s12 }
  0x9b   : > { %216 = vst [vmem:[%s584_s21] sm:$0x7] %v215_v9 }
  0x9c   : > { %221 = vst [vmem:[%s584_s21 + $0x3] sm:$0xff] %v217_v10  ;;  %s233_s22 = sadd.s32 (%p560_p5), %s480_s11, %s382_s9 }
  0x9d   : > { %223 = vst [vmem:[%s584_s21 + $0x13] sm:$0xff] %v219_v12  ;;  %231 = sbr.rel (!%p560_p5) target bundleno = 172 (0xac), region = 36  ;;  %s376_s23 = sshll.u32 (%p560_p5), %s233_s22, 3 }
  0x9e   : > { %s235_s27 = scalar_lea.vmem (%p560_p5), %s627_s2, %s376_s23 }
  0x9f   : > { %v220_v13 = vld [vmem:[#allocation2 + $0x8] sm:$0xff] }
  0xa0   : > { %v218_v11 = vld [vmem:[#allocation2] sm:$0xff]  ;;  %224 = vst [vmem:[%s584_s21 + $0x1b] sm:$0xff] %v220_v13 }
  0xa1   : > { %222 = vst [vmem:[%s584_s21 + $0xb] sm:$0xff] %v218_v11 }
  0xa3   : > { %v272_v14 = vld [vmem:[%s584_s21] sm:$0xff] }
  0xa4   : > { %273 = vst [vmem:[%s235_s27] sm:$0xff] %v272_v14 }
  0xa7   : > { %v278_v17 = vld [vmem:[%s584_s21 + $0x18] sm:$0xff]  ;;  %v280_v18 = vld [vmem:[%s584_s21 + $0x20] sm:$0xff] }
  0xa8   : > { %v274_v15 = vld [vmem:[%s584_s21 + $0x8] sm:$0xff]  ;;  %v276_v16 = vld [vmem:[%s584_s21 + $0x10] sm:$0xff]  ;;  %279 = vst [vmem:[%s235_s27 + $0x48] sm:$0xff] %v278_v17 }
  0xa9   : > { %275 = vst [vmem:[%s235_s27 + $0x18] sm:$0xff] %v274_v15 }
  0xaa   : > { %277 = vst [vmem:[%s235_s27 + $0x30] sm:$0xff] %v276_v16 }
  0xab   : > { %281 = vst [vmem:[%s235_s27 + $0x60] sm:$0xff] %v280_v18 }
  0xac PF: > { %s12_s15 = sadd.s32 1, %s496_s15   ;;  %s629_s9 = smov %s476_s10 }
  0xad   : > { %p9_p12 = scmp.ge.s32.totalorder %s12_s15, 8   ;;  %s630_s10 = smov %s571_s24 }
  0xae   : > { %s631_s11 = smov %s488_s13  ;;  %s632_s12 = smov %s492_s14 }
  0xaf   : > { %s633_s13 = smov %s636_s16  ;;  %s634_s14 = smov %s640_s17 }
  0xb0   :  { %11 = sbr.rel (!%p9_p12) target bundleno = 4 (0x4), region = 103 }

</bundles_post_ra>
